<compile_context>
chip_gen: v7x
topology: tpu7x:2x2x1
jax: 0.10.0
libtpu: 0.0.40
codegen_flags: <defaults>
</compile_context>

<pallas_src>
import functools
import math

import jax
import jax.numpy as jnp
from jax import lax
from jax.experimental import pallas as pl
from jax.experimental.pallas import tpu as pltpu

_SUB = 8     # sublanes per f32 vreg
_LANE = 128  # lanes per vreg
_UNIT = _SUB * _LANE  # 1024 elements = one full f32 vreg tile


def _round_up(x: int, m: int) -> int:
    return (x + m - 1) // m * m


def _lif_chunk_kernel(x_ref, s_ref, u_ref, *, u_th: float, beta: float,
                      tt: int, n_sub: int, t_unroll: int):
    """Run `tt` LIF time steps on one feature block.

    x_ref: (tt, 1, n_sub, 8, SUB_L) input currents (VMEM)
    s_ref: (tt, 1, n_sub, 8, SUB_L) output spikes   (VMEM)
    u_ref: (n_sub, 8, SUB_L) membrane potential, persists across time blocks
    """
    t_blk = pl.program_id(1)  # time = innermost ("arbitrary") grid axis

    @pl.when(t_blk == 0)
    def _():
        u_ref[...] = jnp.zeros_like(u_ref)

    def col_body(c, carry):
        # Per sub-chunk: u stays in ~4 vregs across the unrolled time loop;
        # u_ref VMEM is read/written once per (block, sub-chunk).
        def step(i, u):
            u = beta * u + x_ref[i, 0, c].astype(jnp.float32)  # leak + input (VPU)
            fired = u >= u_th                                  # spike condition
            s_ref[i, 0, c] = fired.astype(s_ref.dtype)         # emit 0/1 spikes
            return jnp.where(fired, u - u_th, u)               # soft reset (select)

        u_ref[c] = lax.fori_loop(0, tt, step, u_ref[c], unroll=t_unroll)
        return carry

    lax.fori_loop(0, n_sub, col_body, 0)


def local_lif_forward(inputs: jax.Array, u_th: float, beta: float, *,
                      time_tile: int = 64, lane_groups: int = 16,
                      out_dtype=None) -> jax.Array:
    """LocalLIF forward. inputs: [T, ...] -> spikes with the same shape.

    Layout: trailing dims flattened to M, (conditionally) zero-padded and viewed
    as [T_pad, num_f, n_sub, 8, SUB_L], i.e. each feature block is contiguous
    per time step (long DMA runs) and each sub-chunk is a dense (8, SUB_L)
    vreg tile. Zero padding never spikes and is sliced off afterwards.
    """
    orig_shape = inputs.shape
    T = orig_shape[0]
    M = int(math.prod(orig_shape[1:])) if len(orig_shape) > 1 else 1
    out_dtype = inputs.dtype if out_dtype is None else jnp.dtype(out_dtype)

    # ---- feature tiling -----------------------------------------------------
    n_units = max(1, -(-M // _UNIT))
    grp = max(1, min(lane_groups, n_units))
    if n_units >= 2:
        # v7x has 2 TensorCores: keep at least 2 feature chunks when possible.
        grp = min(grp, -(-n_units // 2))
    n_units_pad = _round_up(n_units, grp)
    num_f = n_units_pad // grp
    TN = grp * _LANE                     # lanes per feature block
    M_pad = n_units_pad * _UNIT

    # Sub-chunk width (lanes) so carried u is <= 4 vregs per sub-chunk.
    SUB_L = _LANE
    for cand in (512, 256):
        if TN % cand == 0:
            SUB_L = cand
            break
    n_sub = TN // SUB_L

    # ---- generation-aware VMEM budget --------------------------------------
    try:
        info = pltpu.get_tpu_info()
        phys_vmem = int(getattr(info, "vmem_capacity_bytes", 0)) or (64 << 20)
    except Exception:  # CPU / interpret / older runtime: assume smallest (v7x)
        phys_vmem = 64 << 20
    cap = min(100 << 20, (phys_vmem * 3) // 4)   # <=48 MiB on v7x, more on v5e/v6e

    x_item = jnp.dtype(inputs.dtype).itemsize
    o_item = out_dtype.itemsize
    scratch_bytes = _SUB * TN * 4

    # ---- time tiling (auto-shrink to fit the VMEM cap) ----------------------
    TT = max(1, min(time_tile, T))
    def _demand(tt):
        blk = tt * _SUB * TN * (x_item + o_item)
        return 2 * blk + scratch_bytes + (2 << 20)   # double-buffered in+out
    while _demand(TT) > cap and TT > 8:
        TT = max(8, TT // 2)
    T_pad = _round_up(T, TT)
    num_t = T_pad // TT

    # ---- wrapper-side layout (pad/slice only when needed) -------------------
    need_pad = (T_pad != T) or (M_pad != M)
    x2 = inputs.reshape(T, M)
    if need_pad:
        x2 = jnp.pad(x2, ((0, T_pad - T), (0, M_pad - M)))
    xv = x2.reshape(T_pad, num_f, n_sub, _SUB, SUB_L)

    vmem_limit = min(cap, max(_round_up(_demand(TT), 1 << 20), 16 << 20))

    kernel = functools.partial(_lif_chunk_kernel, u_th=float(u_th),
                               beta=float(beta), tt=TT, n_sub=n_sub,
                               t_unroll=min(8, TT))

    spikes = pl.pallas_call(
        kernel,
        out_shape=jax.ShapeDtypeStruct((T_pad, num_f, n_sub, _SUB, SUB_L),
                                       out_dtype),
        grid_spec=pltpu.PrefetchScalarGridSpec(
            num_scalar_prefetch=0,
            grid=(num_f, num_t),  # feature chunks parallel, time sequential
            in_specs=[pl.BlockSpec((TT, 1, n_sub, _SUB, SUB_L),
                                   lambda f, t: (t, f, 0, 0, 0))],
            out_specs=pl.BlockSpec((TT, 1, n_sub, _SUB, SUB_L),
                                   lambda f, t: (t, f, 0, 0, 0)),
            scratch_shapes=[pltpu.VMEM((n_sub, _SUB, SUB_L), jnp.float32)],
        ),
        compiler_params=pltpu.CompilerParams(
            dimension_semantics=("parallel", "arbitrary"),
            vmem_limit_bytes=int(vmem_limit),
        ),
    )(xv)

    out = spikes.reshape(T_pad, M_pad)
    if need_pad:
        out = out[:T, :M]
    return out.reshape(orig_shape)


def gaussian_sampler(key: jax.Array, sample_num: int, shape) -> jax.Array:
    """JAX analogue of `random_sampler(sample_num, inputs.shape, device)`.

    Only the sparse-ZO backward consumes these directions; the forward does not
    call this (perf-review: avoids a sample_num x input-size HBM stream).
    """
    return jax.random.normal(key, (sample_num, *shape), dtype=jnp.float32)


def local_lif_reference(inputs, u_th, beta):
    """Plain-JAX reference (lax.scan) for verification."""
    def step(u, x):
        u = beta * u + x
        s = (u >= u_th).astype(inputs.dtype)
        return u - s * u_th, s

    u0 = jnp.zeros(inputs.shape[1:], dtype=jnp.float32)
    _, spikes = jax.lax.scan(step, u0, inputs)
    return spikes


if __name__ == "__main__":
    # LocalLIF hyper-parameters (deterministic, in-script).
    u_th, beta, sigma, sample_num = 1.0, 0.9, 0.1, 5

    # Small spike-sequence-encoder shapes: seq=8, batch=2, hidden=128.
    T, B, N = 8, 2, 128
    key = jax.random.PRNGKey(0)
    x = jax.random.normal(key, (T, B, N), dtype=jnp.float32) * 0.7
    # NOTE: z (ZO random directions) is deliberately not drawn here — it is
    # unused by the forward and is generated lazily in the ZO backward.

    spikes = jax.block_until_ready(local_lif_forward(x, u_th, beta))
    ref = jax.block_until_ready(local_lif_reference(x, u_th, beta))

    assert spikes.shape == x.shape and spikes.dtype == x.dtype
    assert bool(jnp.all(spikes == ref)), "Pallas LIF kernel mismatch vs reference"

    print("KERNEL_OK")
</pallas_src>

<mosaic_0001>
module attributes {stable_mosaic.version = 11 : i64} {
  func.func @_lif_chunk_kernel(%arg0: i32, %arg1: i32, %arg2: memref<8x1x1x8x128xf32, #tpu.memory_space<vmem>>, %arg3: memref<8x1x1x8x128xf32, #tpu.memory_space<vmem>>, %arg4: memref<1x8x128xf32, #tpu.memory_space<vmem>>) attributes {dimension_semantics = [#tpu.dimension_semantics<parallel>, #tpu.dimension_semantics<arbitrary>], iteration_bounds = array<i64: 1, 1>, scalar_prefetch = 0 : i64, scratch_operands = 1 : i64, tpu.core_type = #tpu.core_type<tc>, window_params = [{transform_indices = @transform_0, window_bounds = array<i64: 8, 1, 1, 8, 128>}, {transform_indices = @transform_1, window_bounds = array<i64: 8, 1, 1, 8, 128>}]} {
    %c0_i32 = arith.constant 0 : i32
    %0 = arith.cmpi eq, %arg1, %c0_i32 : i32
    %1 = arith.extui %0 : i1 to i32
    %c0_i32_0 = arith.constant 0 : i32
    %2 = arith.cmpi ne, %1, %c0_i32_0 : i32
    scf.if %2 {
      %cst_78 = arith.constant 0.000000e+00 : f32
      %162 = vector.broadcast %cst_78 : f32 to vector<1x8x128xf32>
      %c0_79 = arith.constant 0 : index
      %c0_80 = arith.constant 0 : index
      %c0_81 = arith.constant 0 : index
      %163 = vector.load %arg4[%c0_79, %c0_80, %c0_81] : memref<1x8x128xf32, #tpu.memory_space<vmem>>, vector<1x8x128xf32>
      tpu.vector_store %arg4[%c0_79, %c0_80, %c0_81], %162 {strides = array<i32>} : memref<1x8x128xf32, #tpu.memory_space<vmem>>, vector<1x8x128xf32>,
    } else {
    }
    %c0_i32_1 = arith.constant 0 : i32
    %3 = arith.index_cast %c0_i32_1 : i32 to index
    %c0 = arith.constant 0 : index
    %c0_2 = arith.constant 0 : index
    %4 = vector.load %arg4[%3, %c0, %c0_2] : memref<1x8x128xf32, #tpu.memory_space<vmem>>, vector<1x8x128xf32>
    %5 = vector.shape_cast %4 : vector<1x8x128xf32> to vector<8x128xf32>
    %c0_i32_3 = arith.constant 0 : i32
    %cst = arith.constant 0.899999976 : f32
    %6 = vector.broadcast %cst : f32 to vector<8x128xf32>
    %7 = arith.mulf %6, %5 : vector<8x128xf32>
    %8 = arith.index_cast %c0_i32_3 : i32 to index
    %c0_4 = arith.constant 0 : index
    %9 = arith.index_cast %c0_i32_1 : i32 to index
    %c0_5 = arith.constant 0 : index
    %c0_6 = arith.constant 0 : index
    %10 = vector.load %arg2[%8, %c0_4, %9, %c0_5, %c0_6] : memref<8x1x1x8x128xf32, #tpu.memory_space<vmem>>, vector<1x1x1x8x128xf32>
    %11 = vector.shape_cast %10 : vector<1x1x1x8x128xf32> to vector<8x128xf32>
    %12 = arith.addf %7, %11 : vector<8x128xf32>
    %cst_7 = arith.constant 1.000000e+00 : f32
    %13 = vector.broadcast %cst_7 : f32 to vector<8x128xf32>
    %14 = arith.cmpf oge, %12, %13 : vector<8x128xf32>
    %15 = arith.extui %14 : vector<8x128xi1> to vector<8x128xi32>
    %16 = arith.sitofp %15 : vector<8x128xi32> to vector<8x128xf32>
    %17 = arith.index_cast %c0_i32_3 : i32 to index
    %c0_8 = arith.constant 0 : index
    %18 = arith.index_cast %c0_i32_1 : i32 to index
    %c0_9 = arith.constant 0 : index
    %c0_10 = arith.constant 0 : index
    %19 = vector.load %arg3[%17, %c0_8, %18, %c0_9, %c0_10] : memref<8x1x1x8x128xf32, #tpu.memory_space<vmem>>, vector<1x1x1x8x128xf32>
    %20 = vector.shape_cast %19 : vector<1x1x1x8x128xf32> to vector<8x128xf32>
    %21 = vector.shape_cast %16 : vector<8x128xf32> to vector<1x1x1x8x128xf32>
    tpu.vector_store %arg3[%17, %c0_8, %18, %c0_9, %c0_10], %21 {strides = array<i32>} : memref<8x1x1x8x128xf32, #tpu.memory_space<vmem>>, vector<1x1x1x8x128xf32>,
    %cst_11 = arith.constant 1.000000e+00 : f32
    %22 = vector.broadcast %cst_11 : f32 to vector<8x128xf32>
    %23 = arith.subf %12, %22 : vector<8x128xf32>
    %24 = arith.select %14, %23, %12 : vector<8x128xi1>, vector<8x128xf32>
    %c1_i32 = arith.constant 1 : i32
    %cst_12 = arith.constant 0.899999976 : f32
    %25 = vector.broadcast %cst_12 : f32 to vector<8x128xf32>
    %26 = arith.mulf %25, %24 : vector<8x128xf32>
    %27 = arith.index_cast %c1_i32 : i32 to index
    %c0_13 = arith.constant 0 : index
    %28 = arith.index_cast %c0_i32_1 : i32 to index
    %c0_14 = arith.constant 0 : index
    %c0_15 = arith.constant 0 : index
    %29 = vector.load %arg2[%27, %c0_13, %28, %c0_14, %c0_15] : memref<8x1x1x8x128xf32, #tpu.memory_space<vmem>>, vector<1x1x1x8x128xf32>
    %30 = vector.shape_cast %29 : vector<1x1x1x8x128xf32> to vector<8x128xf32>
    %31 = arith.addf %26, %30 : vector<8x128xf32>
    %cst_16 = arith.constant 1.000000e+00 : f32
    %32 = vector.broadcast %cst_16 : f32 to vector<8x128xf32>
    %33 = arith.cmpf oge, %31, %32 : vector<8x128xf32>
    %34 = arith.extui %33 : vector<8x128xi1> to vector<8x128xi32>
    %35 = arith.sitofp %34 : vector<8x128xi32> to vector<8x128xf32>
    %36 = arith.index_cast %c1_i32 : i32 to index
    %c0_17 = arith.constant 0 : index
    %37 = arith.index_cast %c0_i32_1 : i32 to index
    %c0_18 = arith.constant 0 : index
    %c0_19 = arith.constant 0 : index
    %38 = vector.load %arg3[%36, %c0_17, %37, %c0_18, %c0_19] : memref<8x1x1x8x128xf32, #tpu.memory_space<vmem>>, vector<1x1x1x8x128xf32>
    %39 = vector.shape_cast %38 : vector<1x1x1x8x128xf32> to vector<8x128xf32>
    %40 = vector.shape_cast %35 : vector<8x128xf32> to vector<1x1x1x8x128xf32>
    tpu.vector_store %arg3[%36, %c0_17, %37, %c0_18, %c0_19], %40 {strides = array<i32>} : memref<8x1x1x8x128xf32, #tpu.memory_space<vmem>>, vector<1x1x1x8x128xf32>,
    %cst_20 = arith.constant 1.000000e+00 : f32
    %41 = vector.broadcast %cst_20 : f32 to vector<8x128xf32>
    %42 = arith.subf %31, %41 : vector<8x128xf32>
    %43 = arith.select %33, %42, %31 : vector<8x128xi1>, vector<8x128xf32>
    %c2_i32 = arith.constant 2 : i32
    %cst_21 = arith.constant 0.899999976 : f32
    %44 = vector.broadcast %cst_21 : f32 to vector<8x128xf32>
    %45 = arith.mulf %44, %43 : vector<8x128xf32>
    %46 = arith.index_cast %c2_i32 : i32 to index
    %c0_22 = arith.constant 0 : index
    %47 = arith.index_cast %c0_i32_1 : i32 to index
    %c0_23 = arith.constant 0 : index
    %c0_24 = arith.constant 0 : index
    %48 = vector.load %arg2[%46, %c0_22, %47, %c0_23, %c0_24] : memref<8x1x1x8x128xf32, #tpu.memory_space<vmem>>, vector<1x1x1x8x128xf32>
    %49 = vector.shape_cast %48 : vector<1x1x1x8x128xf32> to vector<8x128xf32>
    %50 = arith.addf %45, %49 : vector<8x128xf32>
    %cst_25 = arith.constant 1.000000e+00 : f32
    %51 = vector.broadcast %cst_25 : f32 to vector<8x128xf32>
    %52 = arith.cmpf oge, %50, %51 : vector<8x128xf32>
    %53 = arith.extui %52 : vector<8x128xi1> to vector<8x128xi32>
    %54 = arith.sitofp %53 : vector<8x128xi32> to vector<8x128xf32>
    %55 = arith.index_cast %c2_i32 : i32 to index
    %c0_26 = arith.constant 0 : index
    %56 = arith.index_cast %c0_i32_1 : i32 to index
    %c0_27 = arith.constant 0 : index
    %c0_28 = arith.constant 0 : index
    %57 = vector.load %arg3[%55, %c0_26, %56, %c0_27, %c0_28] : memref<8x1x1x8x128xf32, #tpu.memory_space<vmem>>, vector<1x1x1x8x128xf32>
    %58 = vector.shape_cast %57 : vector<1x1x1x8x128xf32> to vector<8x128xf32>
    %59 = vector.shape_cast %54 : vector<8x128xf32> to vector<1x1x1x8x128xf32>
    tpu.vector_store %arg3[%55, %c0_26, %56, %c0_27, %c0_28], %59 {strides = array<i32>} : memref<8x1x1x8x128xf32, #tpu.memory_space<vmem>>, vector<1x1x1x8x128xf32>,
    %cst_29 = arith.constant 1.000000e+00 : f32
    %60 = vector.broadcast %cst_29 : f32 to vector<8x128xf32>
    %61 = arith.subf %50, %60 : vector<8x128xf32>
    %62 = arith.select %52, %61, %50 : vector<8x128xi1>, vector<8x128xf32>
    %c3_i32 = arith.constant 3 : i32
    %cst_30 = arith.constant 0.899999976 : f32
    %63 = vector.broadcast %cst_30 : f32 to vector<8x128xf32>
    %64 = arith.mulf %63, %62 : vector<8x128xf32>
    %65 = arith.index_cast %c3_i32 : i32 to index
    %c0_31 = arith.constant 0 : index
    %66 = arith.index_cast %c0_i32_1 : i32 to index
    %c0_32 = arith.constant 0 : index
    %c0_33 = arith.constant 0 : index
    %67 = vector.load %arg2[%65, %c0_31, %66, %c0_32, %c0_33] : memref<8x1x1x8x128xf32, #tpu.memory_space<vmem>>, vector<1x1x1x8x128xf32>
    %68 = vector.shape_cast %67 : vector<1x1x1x8x128xf32> to vector<8x128xf32>
    %69 = arith.addf %64, %68 : vector<8x128xf32>
    %cst_34 = arith.constant 1.000000e+00 : f32
    %70 = vector.broadcast %cst_34 : f32 to vector<8x128xf32>
    %71 = arith.cmpf oge, %69, %70 : vector<8x128xf32>
    %72 = arith.extui %71 : vector<8x128xi1> to vector<8x128xi32>
    %73 = arith.sitofp %72 : vector<8x128xi32> to vector<8x128xf32>
    %74 = arith.index_cast %c3_i32 : i32 to index
    %c0_35 = arith.constant 0 : index
    %75 = arith.index_cast %c0_i32_1 : i32 to index
    %c0_36 = arith.constant 0 : index
    %c0_37 = arith.constant 0 : index
    %76 = vector.load %arg3[%74, %c0_35, %75, %c0_36, %c0_37] : memref<8x1x1x8x128xf32, #tpu.memory_space<vmem>>, vector<1x1x1x8x128xf32>
    %77 = vector.shape_cast %76 : vector<1x1x1x8x128xf32> to vector<8x128xf32>
    %78 = vector.shape_cast %73 : vector<8x128xf32> to vector<1x1x1x8x128xf32>
    tpu.vector_store %arg3[%74, %c0_35, %75, %c0_36, %c0_37], %78 {strides = array<i32>} : memref<8x1x1x8x128xf32, #tpu.memory_space<vmem>>, vector<1x1x1x8x128xf32>,
    %cst_38 = arith.constant 1.000000e+00 : f32
    %79 = vector.broadcast %cst_38 : f32 to vector<8x128xf32>
    %80 = arith.subf %69, %79 : vector<8x128xf32>
    %81 = arith.select %71, %80, %69 : vector<8x128xi1>, vector<8x128xf32>
    %c4_i32 = arith.constant 4 : i32
    %cst_39 = arith.constant 0.899999976 : f32
    %82 = vector.broadcast %cst_39 : f32 to vector<8x128xf32>
    %83 = arith.mulf %82, %81 : vector<8x128xf32>
    %84 = arith.index_cast %c4_i32 : i32 to index
    %c0_40 = arith.constant 0 : index
    %85 = arith.index_cast %c0_i32_1 : i32 to index
    %c0_41 = arith.constant 0 : index
    %c0_42 = arith.constant 0 : index
    %86 = vector.load %arg2[%84, %c0_40, %85, %c0_41, %c0_42] : memref<8x1x1x8x128xf32, #tpu.memory_space<vmem>>, vector<1x1x1x8x128xf32>
    %87 = vector.shape_cast %86 : vector<1x1x1x8x128xf32> to vector<8x128xf32>
    %88 = arith.addf %83, %87 : vector<8x128xf32>
    %cst_43 = arith.constant 1.000000e+00 : f32
    %89 = vector.broadcast %cst_43 : f32 to vector<8x128xf32>
    %90 = arith.cmpf oge, %88, %89 : vector<8x128xf32>
    %91 = arith.extui %90 : vector<8x128xi1> to vector<8x128xi32>
    %92 = arith.sitofp %91 : vector<8x128xi32> to vector<8x128xf32>
    %93 = arith.index_cast %c4_i32 : i32 to index
    %c0_44 = arith.constant 0 : index
    %94 = arith.index_cast %c0_i32_1 : i32 to index
    %c0_45 = arith.constant 0 : index
    %c0_46 = arith.constant 0 : index
    %95 = vector.load %arg3[%93, %c0_44, %94, %c0_45, %c0_46] : memref<8x1x1x8x128xf32, #tpu.memory_space<vmem>>, vector<1x1x1x8x128xf32>
    %96 = vector.shape_cast %95 : vector<1x1x1x8x128xf32> to vector<8x128xf32>
    %97 = vector.shape_cast %92 : vector<8x128xf32> to vector<1x1x1x8x128xf32>
    tpu.vector_store %arg3[%93, %c0_44, %94, %c0_45, %c0_46], %97 {strides = array<i32>} : memref<8x1x1x8x128xf32, #tpu.memory_space<vmem>>, vector<1x1x1x8x128xf32>,
    %cst_47 = arith.constant 1.000000e+00 : f32
    %98 = vector.broadcast %cst_47 : f32 to vector<8x128xf32>
    %99 = arith.subf %88, %98 : vector<8x128xf32>
    %100 = arith.select %90, %99, %88 : vector<8x128xi1>, vector<8x128xf32>
    %c5_i32 = arith.constant 5 : i32
    %cst_48 = arith.constant 0.899999976 : f32
    %101 = vector.broadcast %cst_48 : f32 to vector<8x128xf32>
    %102 = arith.mulf %101, %100 : vector<8x128xf32>
    %103 = arith.index_cast %c5_i32 : i32 to index
    %c0_49 = arith.constant 0 : index
    %104 = arith.index_cast %c0_i32_1 : i32 to index
    %c0_50 = arith.constant 0 : index
    %c0_51 = arith.constant 0 : index
    %105 = vector.load %arg2[%103, %c0_49, %104, %c0_50, %c0_51] : memref<8x1x1x8x128xf32, #tpu.memory_space<vmem>>, vector<1x1x1x8x128xf32>
    %106 = vector.shape_cast %105 : vector<1x1x1x8x128xf32> to vector<8x128xf32>
    %107 = arith.addf %102, %106 : vector<8x128xf32>
    %cst_52 = arith.constant 1.000000e+00 : f32
    %108 = vector.broadcast %cst_52 : f32 to vector<8x128xf32>
    %109 = arith.cmpf oge, %107, %108 : vector<8x128xf32>
    %110 = arith.extui %109 : vector<8x128xi1> to vector<8x128xi32>
    %111 = arith.sitofp %110 : vector<8x128xi32> to vector<8x128xf32>
    %112 = arith.index_cast %c5_i32 : i32 to index
    %c0_53 = arith.constant 0 : index
    %113 = arith.index_cast %c0_i32_1 : i32 to index
    %c0_54 = arith.constant 0 : index
    %c0_55 = arith.constant 0 : index
    %114 = vector.load %arg3[%112, %c0_53, %113, %c0_54, %c0_55] : memref<8x1x1x8x128xf32, #tpu.memory_space<vmem>>, vector<1x1x1x8x128xf32>
    %115 = vector.shape_cast %114 : vector<1x1x1x8x128xf32> to vector<8x128xf32>
    %116 = vector.shape_cast %111 : vector<8x128xf32> to vector<1x1x1x8x128xf32>
    tpu.vector_store %arg3[%112, %c0_53, %113, %c0_54, %c0_55], %116 {strides = array<i32>} : memref<8x1x1x8x128xf32, #tpu.memory_space<vmem>>, vector<1x1x1x8x128xf32>,
    %cst_56 = arith.constant 1.000000e+00 : f32
    %117 = vector.broadcast %cst_56 : f32 to vector<8x128xf32>
    %118 = arith.subf %107, %117 : vector<8x128xf32>
    %119 = arith.select %109, %118, %107 : vector<8x128xi1>, vector<8x128xf32>
    %c6_i32 = arith.constant 6 : i32
    %cst_57 = arith.constant 0.899999976 : f32
    %120 = vector.broadcast %cst_57 : f32 to vector<8x128xf32>
    %121 = arith.mulf %120, %119 : vector<8x128xf32>
    %122 = arith.index_cast %c6_i32 : i32 to index
    %c0_58 = arith.constant 0 : index
    %123 = arith.index_cast %c0_i32_1 : i32 to index
    %c0_59 = arith.constant 0 : index
    %c0_60 = arith.constant 0 : index
    %124 = vector.load %arg2[%122, %c0_58, %123, %c0_59, %c0_60] : memref<8x1x1x8x128xf32, #tpu.memory_space<vmem>>, vector<1x1x1x8x128xf32>
    %125 = vector.shape_cast %124 : vector<1x1x1x8x128xf32> to vector<8x128xf32>
    %126 = arith.addf %121, %125 : vector<8x128xf32>
    %cst_61 = arith.constant 1.000000e+00 : f32
    %127 = vector.broadcast %cst_61 : f32 to vector<8x128xf32>
    %128 = arith.cmpf oge, %126, %127 : vector<8x128xf32>
    %129 = arith.extui %128 : vector<8x128xi1> to vector<8x128xi32>
    %130 = arith.sitofp %129 : vector<8x128xi32> to vector<8x128xf32>
    %131 = arith.index_cast %c6_i32 : i32 to index
    %c0_62 = arith.constant 0 : index
    %132 = arith.index_cast %c0_i32_1 : i32 to index
    %c0_63 = arith.constant 0 : index
    %c0_64 = arith.constant 0 : index
    %133 = vector.load %arg3[%131, %c0_62, %132, %c0_63, %c0_64] : memref<8x1x1x8x128xf32, #tpu.memory_space<vmem>>, vector<1x1x1x8x128xf32>
    %134 = vector.shape_cast %133 : vector<1x1x1x8x128xf32> to vector<8x128xf32>
    %135 = vector.shape_cast %130 : vector<8x128xf32> to vector<1x1x1x8x128xf32>
    tpu.vector_store %arg3[%131, %c0_62, %132, %c0_63, %c0_64], %135 {strides = array<i32>} : memref<8x1x1x8x128xf32, #tpu.memory_space<vmem>>, vector<1x1x1x8x128xf32>,
    %cst_65 = arith.constant 1.000000e+00 : f32
    %136 = vector.broadcast %cst_65 : f32 to vector<8x128xf32>
    %137 = arith.subf %126, %136 : vector<8x128xf32>
    %138 = arith.select %128, %137, %126 : vector<8x128xi1>, vector<8x128xf32>
    %c7_i32 = arith.constant 7 : i32
    %cst_66 = arith.constant 0.899999976 : f32
    %139 = vector.broadcast %cst_66 : f32 to vector<8x128xf32>
    %140 = arith.mulf %139, %138 : vector<8x128xf32>
    %141 = arith.index_cast %c7_i32 : i32 to index
    %c0_67 = arith.constant 0 : index
    %142 = arith.index_cast %c0_i32_1 : i32 to index
    %c0_68 = arith.constant 0 : index
    %c0_69 = arith.constant 0 : index
    %143 = vector.load %arg2[%141, %c0_67, %142, %c0_68, %c0_69] : memref<8x1x1x8x128xf32, #tpu.memory_space<vmem>>, vector<1x1x1x8x128xf32>
    %144 = vector.shape_cast %143 : vector<1x1x1x8x128xf32> to vector<8x128xf32>
    %145 = arith.addf %140, %144 : vector<8x128xf32>
    %cst_70 = arith.constant 1.000000e+00 : f32
    %146 = vector.broadcast %cst_70 : f32 to vector<8x128xf32>
    %147 = arith.cmpf oge, %145, %146 : vector<8x128xf32>
    %148 = arith.extui %147 : vector<8x128xi1> to vector<8x128xi32>
    %149 = arith.sitofp %148 : vector<8x128xi32> to vector<8x128xf32>
    %150 = arith.index_cast %c7_i32 : i32 to index
    %c0_71 = arith.constant 0 : index
    %151 = arith.index_cast %c0_i32_1 : i32 to index
    %c0_72 = arith.constant 0 : index
    %c0_73 = arith.constant 0 : index
    %152 = vector.load %arg3[%150, %c0_71, %151, %c0_72, %c0_73] : memref<8x1x1x8x128xf32, #tpu.memory_space<vmem>>, vector<1x1x1x8x128xf32>
    %153 = vector.shape_cast %152 : vector<1x1x1x8x128xf32> to vector<8x128xf32>
    %154 = vector.shape_cast %149 : vector<8x128xf32> to vector<1x1x1x8x128xf32>
    tpu.vector_store %arg3[%150, %c0_71, %151, %c0_72, %c0_73], %154 {strides = array<i32>} : memref<8x1x1x8x128xf32, #tpu.memory_space<vmem>>, vector<1x1x1x8x128xf32>,
    %cst_74 = arith.constant 1.000000e+00 : f32
    %155 = vector.broadcast %cst_74 : f32 to vector<8x128xf32>
    %156 = arith.subf %145, %155 : vector<8x128xf32>
    %157 = arith.select %147, %156, %145 : vector<8x128xi1>, vector<8x128xf32>
    %c8_i32 = arith.constant 8 : i32
    %158 = arith.index_cast %c0_i32_1 : i32 to index
    %c0_75 = arith.constant 0 : index
    %c0_76 = arith.constant 0 : index
    %159 = vector.load %arg4[%158, %c0_75, %c0_76] : memref<1x8x128xf32, #tpu.memory_space<vmem>>, vector<1x8x128xf32>
    %160 = vector.shape_cast %159 : vector<1x8x128xf32> to vector<8x128xf32>
    %161 = vector.shape_cast %157 : vector<8x128xf32> to vector<1x8x128xf32>
    tpu.vector_store %arg4[%158, %c0_75, %c0_76], %161 {strides = array<i32>} : memref<1x8x128xf32, #tpu.memory_space<vmem>>, vector<1x8x128xf32>,
    %c1_i32_77 = arith.constant 1 : i32
    return
  }
  func.func @transform_0(%arg0: i32, %arg1: i32) -> (i32, i32, i32, i32, i32) {
    %c0_i32 = arith.constant 0 : i32
    %c0_i32_0 = arith.constant 0 : i32
    %c0_i32_1 = arith.constant 0 : i32
    %c0_i32_2 = arith.constant 0 : i32
    return %arg1, %arg0, %c0_i32, %c0_i32_0, %c0_i32_1 : i32, i32, i32, i32, i32
  }
  func.func @transform_1(%arg0: i32, %arg1: i32) -> (i32, i32, i32, i32, i32) {
    %c0_i32 = arith.constant 0 : i32
    %c0_i32_0 = arith.constant 0 : i32
    %c0_i32_1 = arith.constant 0 : i32
    %c0_i32_2 = arith.constant 0 : i32
    return %arg1, %arg0, %c0_i32, %c0_i32_0, %c0_i32_1 : i32, i32, i32, i32, i32
  }
}

</mosaic_0001>

<bundles_post_ra>
// kernel: tpu_custom_call.1
= control target key start
LH: loop header
LB: loop body
LE: loop exit
PB: predicated region body
PF: predicated region fallthrough
CT: control target
= control target key end

     0   :  { %6 = vsyncpa [#allocation4], 0  ;;  %s247_s0 = inlined_call_operand.hbm [shape: f32[8,1,1,8,128], index: 0, kind: input, shape index: {}]   ;;  %s248_s1 = inlined_call_operand.hbm [shape: f32[8,1,1,8,128], index: 1, kind: output, shape index: {}]  }
   0x1   :  { %7 = vsyncpa [#allocation5], 0  ;;  %s202_s6 = smov [#allocation3]   ;;  %s154_s10 = scalar_lea.hbm %s247_s0, 1024 }
   0x2   :  { %s13_s7 = sshll.u32 %s202_s6, 4  ;;  %p155_p0 = scmp.ne.s32.totalorder %s247_s0, %s154_s10  ;;  %s14_s7 = int_to_ptr.vmem [resolvable:$true] %s13_s7 }
   0x3   :  { %p158_p1 = scmp.lt.u32.totalorder %s154_s10, %s247_s0 }
   0x5   :  { %p160_p2 = pnand %p158_p1, %p155_p0 }
   0x7   :  { %163 = shalt.err (!%p160_p2)
}
   0x8   :  { %s164_s15 = scalar_lea.vmem %s14_s7, 1024  ;;  %p169_p4 = scmp.lt.s32.totalorder %s14_s7, %s14_s7 }
   0x9   :  { %p165_p3 = scmp.ne.s32.totalorder %s14_s7, %s164_s15  ;;  %p170_p5 = scmp.lt.s32.totalorder %s164_s15, %s164_s15 }
   0xb   :  { %p171_p6 = por %p170_p5, %p169_p4 }
   0xd   :  { %p172_p7 = pnand %p171_p6, %p165_p3 }
   0xf   :  { %175 = shalt.err (!%p172_p7)
}
  0x10   :  { %s203_s16 = smov 128   ;;  %s204_s17 = smov 8  }
  0x11   :  { %19 = dma.hbm_to_vmem [thread:$0]  %s247_s0, 1024, %s14_s7, [#allocation4], %s203_s16, %s203_s16, %s204_s17  }
  0x12   :  { %198 = dma.done.wait [#allocation4], 1024  }
  0x13   :  { %199 = vsyncadd [#allocation4], 4294966272  ;;  %v30_v0 = vld [vmem:[#allocation3] sm:$0xff]  ;;  %v205_v2 = vmov 0.0   ;;  %v40_v5 = vld [vmem:[#allocation3 + $0x8] sm:$0xff]  ;;  %s206_s0 = smov [#allocation6]  }
  0x14   :  { %vm32_vm0 = vcmp.ge.f32.partialorder %v30_v0, 1.0  ;;  %v134_v1 = vadd.f32 -1.0, %v30_v0  ;;  %v51_v11 = vld [vmem:[#allocation3 + $0x10] sm:$0xff]  ;;  %v62_v17 = vld [vmem:[#allocation3 + $0x18] sm:$0xff]  ;;  %v73_v23 = vld [vmem:[#allocation3 + $0x20] sm:$0xff]  ;;  %s121_s20 = sshll.u32 %s206_s0, 4  ;;  %s122_s20 = int_to_ptr.vmem [resolvable:$true] %s121_s20 }
  0x15   :  { %v133_v3 = vsel %vm32_vm0, 1.0, %v205_v2  ;;  %v84_v29 = vld [vmem:[#allocation3 + $0x28] sm:$0xff]  ;;  %v95_v35 = vld [vmem:[#allocation3 + $0x30] sm:$0xff]  ;;  %v106_v41 = vld [vmem:[#allocation3 + $0x38] sm:$0xff]  ;;  %s176_s21 = scalar_lea.vmem %s122_s20, 1024  ;;  %p181_p9 = scmp.lt.s32.totalorder %s122_s20, %s122_s20 }
  0x16   :  { %35 = vst [vmem:[#allocation6] sm:$0xff] %v133_v3  ;;  %v37_v4 = vsel %vm32_vm0, %v134_v1, %v30_v0  ;;  %p177_p8 = scmp.ne.s32.totalorder %s122_s20, %s176_s21  ;;  %p182_p10 = scmp.lt.s32.totalorder %s176_s21, %s176_s21 }
  0x17   :  { %v38_v6 = vmul.f32 0.9, %v37_v4 }
  0x18   :  { %p183_p11 = por %p182_p10, %p181_p9 }
  0x19   :  { %v41_v7 = vadd.f32 %v40_v5, %v38_v6 }
  0x1a   :  { %p184_p12 = pnand %p183_p11, %p177_p8 }
  0x1b   :  { %vm42_vm1 = vcmp.ge.f32.partialorder %v41_v7, 1.0  ;;  %v136_v8 = vadd.f32 -1.0, %v41_v7 }
  0x1c   :  { %v135_v9 = vsel %vm42_vm1, 1.0, %v205_v2 }
  0x1d   :  { %46 = vst [vmem:[#allocation6 + $0x8] sm:$0xff] %v135_v9  ;;  %v48_v10 = vsel %vm42_vm1, %v136_v8, %v41_v7 }
  0x1e   :  { %v49_v12 = vmul.f32 0.9, %v48_v10 }
  0x20   :  { %v52_v13 = vadd.f32 %v51_v11, %v49_v12 }
  0x22   :  { %vm53_vm2 = vcmp.ge.f32.partialorder %v52_v13, 1.0  ;;  %v138_v14 = vadd.f32 -1.0, %v52_v13 }
  0x23   :  { %v137_v15 = vsel %vm53_vm2, 1.0, %v205_v2 }
  0x24   :  { %57 = vst [vmem:[#allocation6 + $0x10] sm:$0xff] %v137_v15  ;;  %v59_v16 = vsel %vm53_vm2, %v138_v14, %v52_v13 }
  0x25   :  { %v60_v18 = vmul.f32 0.9, %v59_v16 }
  0x27   :  { %v63_v19 = vadd.f32 %v62_v17, %v60_v18 }
  0x29   :  { %vm64_vm3 = vcmp.ge.f32.partialorder %v63_v19, 1.0  ;;  %v140_v20 = vadd.f32 -1.0, %v63_v19 }
  0x2a   :  { %v139_v21 = vsel %vm64_vm3, 1.0, %v205_v2 }
  0x2b   :  { %68 = vst [vmem:[#allocation6 + $0x18] sm:$0xff] %v139_v21  ;;  %v70_v22 = vsel %vm64_vm3, %v140_v20, %v63_v19 }
  0x2c   :  { %v71_v24 = vmul.f32 0.9, %v70_v22 }
  0x2e   :  { %v74_v25 = vadd.f32 %v73_v23, %v71_v24 }
  0x30   :  { %vm75_vm4 = vcmp.ge.f32.partialorder %v74_v25, 1.0  ;;  %v142_v26 = vadd.f32 -1.0, %v74_v25 }
  0x31   :  { %v141_v27 = vsel %vm75_vm4, 1.0, %v205_v2 }
  0x32   :  { %79 = vst [vmem:[#allocation6 + $0x20] sm:$0xff] %v141_v27  ;;  %v81_v28 = vsel %vm75_vm4, %v142_v26, %v74_v25 }
  0x33   :  { %v82_v30 = vmul.f32 0.9, %v81_v28 }
  0x35   :  { %v85_v31 = vadd.f32 %v84_v29, %v82_v30 }
  0x37   :  { %vm86_vm5 = vcmp.ge.f32.partialorder %v85_v31, 1.0  ;;  %v144_v32 = vadd.f32 -1.0, %v85_v31 }
  0x38   :  { %v143_v33 = vsel %vm86_vm5, 1.0, %v205_v2 }
  0x39   :  { %90 = vst [vmem:[#allocation6 + $0x28] sm:$0xff] %v143_v33  ;;  %v92_v34 = vsel %vm86_vm5, %v144_v32, %v85_v31 }
  0x3a   :  { %v93_v36 = vmul.f32 0.9, %v92_v34 }
  0x3c   :  { %v96_v37 = vadd.f32 %v95_v35, %v93_v36 }
  0x3e   :  { %vm97_vm6 = vcmp.ge.f32.partialorder %v96_v37, 1.0  ;;  %v146_v38 = vadd.f32 -1.0, %v96_v37 }
  0x3f   :  { %v145_v39 = vsel %vm97_vm6, 1.0, %v205_v2 }
  0x40   :  { %101 = vst [vmem:[#allocation6 + $0x30] sm:$0xff] %v145_v39  ;;  %v103_v40 = vsel %vm97_vm6, %v146_v38, %v96_v37 }
  0x41   :  { %v104_v42 = vmul.f32 0.9, %v103_v40 }
  0x43   :  { %v107_v43 = vadd.f32 %v106_v41, %v104_v42 }
  0x45   :  { %vm108_vm7 = vcmp.ge.f32.partialorder %v107_v43, 1.0 }
  0x46   :  { %v147_v44 = vsel %vm108_vm7, 1.0, %v205_v2 }
  0x47   :  { %112 = vst [vmem:[#allocation6 + $0x38] sm:$0xff] %v147_v44 }
  0x48   :  { %187 = shalt.err (!%p184_p12)
}
  0x49   :  { %s188_s24 = scalar_lea.hbm %s248_s1, 1024 }
  0x4a   :  { %p189_p13 = scmp.ne.s32.totalorder %s248_s1, %s188_s24  ;;  %p192_p0 = scmp.lt.u32.totalorder %s188_s24, %s248_s1 }
  0x4c   :  { %p194_p1 = pnand %p192_p0, %p189_p13 }
  0x4e   :  { %197 = shalt.err (!%p194_p1)
}
  0x4f   :  { %127 = dma.vmem_to_hbm [thread:$0]  %s122_s20, 1024, %s248_s1, [#allocation5], %s203_s16, %s203_s16, %s204_s17  }
  0x50   :  { %200 = dma.done.wait [#allocation5], 1024  }
  0x51   :  { %201 = vsyncadd [#allocation5], 4294966272 }
  0x52   :  { %131 = vsyncpa [#allocation4], 1 }
  0x53   :  { %132 = vsyncpa [#allocation5], 1 }

</bundles_post_ra>
